<compile_context>
chip_gen: v5e
topology: v5e:2x2
jax: 0.10.0
libtpu: 0.0.40
codegen_flags: <defaults>
</compile_context>

<pallas_src>
import math

import jax
import jax.numpy as jnp
from jax import lax
from jax.experimental import pallas as pl
from jax.experimental.pallas import tpu as pltpu


def _round_up(x, m):
    return ((x + m - 1) // m) * m


# ---------------------------------------------------------------------------
# Kernels
# ---------------------------------------------------------------------------

def _linear_kernel_fullk(x_ref, w_ref, b_ref, o_ref):
    """One (TM, TN) output tile from a single full-K MXU dot.

    x_ref: (TM, K)  w_ref: (TN, K)  b_ref: (1, TN)  o_ref: (TM, TN)
    Weight stays in [vocab, d_model] layout; contract dim 1 of both operands.
    """
    acc = lax.dot_general(
        x_ref[...], w_ref[...],
        dimension_numbers=(((1,), (1,)), ((), ())),
        preferred_element_type=jnp.float32,
    )
    o_ref[...] = (acc + b_ref[...].astype(jnp.float32)).astype(o_ref.dtype)


def _linear_kernel_ktiled(x_ref, w_ref, b_ref, o_ref, acc_ref):
    """K-tiled fallback: f32 accumulator, bias folded into the k==0 init."""
    k = pl.program_id(2)

    @pl.when(k == 0)
    def _():
        acc_ref[...] = jnp.broadcast_to(
            b_ref[...].astype(jnp.float32), acc_ref.shape)

    acc_ref[...] += lax.dot_general(
        x_ref[...], w_ref[...],
        dimension_numbers=(((1,), (1,)), ((), ())),
        preferred_element_type=jnp.float32,
    )

    @pl.when(k == pl.num_programs(2) - 1)
    def _():
        o_ref[...] = acc_ref[...].astype(o_ref.dtype)


# ---------------------------------------------------------------------------
# Tiling / VMEM-budget selection
# ---------------------------------------------------------------------------

def _vmem_budget_bytes():
    """Per-core VMEM budget with headroom (v7x: 64 MiB/TC, v5e/v6e: 128 MiB)."""
    cap = 64 * 1024 * 1024
    try:
        cap = int(pltpu.get_tpu_info().vmem_capacity_bytes)
    except Exception:
        pass
    return max(32 * 1024 * 1024, min(cap - 16 * 1024 * 1024, 96 * 1024 * 1024))


def _choose_tiles(M, K, N, in_itemsize, out_itemsize, budget):
    """Return (TM, TN, TK, k_tiled). All tiles (8,128)-legal; TK == K preferred."""
    M8 = _round_up(M, 8)
    N128 = _round_up(N, 128)

    # Large / 256-aligned candidates first (feeds the 256-wide MXU on v6e/v7x);
    # min(M8, 1024) keeps the whole activation resident for decode-sized M.
    tm_cands = sorted({min(M8, 1024)}
                      | {c for c in (512, 256, 128, 64, 32, 16, 8) if c <= M8},
                      reverse=True)
    tn_cands = sorted({min(N128, 1024)}
                      | {c for c in (512, 256, 128) if c <= N128},
                      reverse=True)
    tk_cands = sorted({min(_round_up(K, 128), 2048)}
                      | {c for c in (1024, 512, 256, 128) if c <= K},
                      reverse=True)

    def fits(tm, tn, tk, k_tiled):
        b = (2 * tm * tk * in_itemsize        # x blocks (double-buffered)
             + 2 * tn * tk * in_itemsize      # W blocks
             + 2 * tm * tn * out_itemsize     # output blocks
             + 2 * tn * 4)                    # bias blocks
        if k_tiled:
            b += tm * tn * 4                  # f32 accumulator scratch
        return b <= budget

    # Pass 1: full-K stripe, no K grid axis (single dot per output tile).
    for tm in tm_cands:
        for tn in tn_cands:
            if fits(tm, tn, K, False):
                return tm, tn, K, False

    # Pass 2: tile K as well (f32 accumulator, K innermost / "arbitrary").
    for tm in tm_cands:
        for tn in tn_cands:
            for tk in tk_cands:
                if fits(tm, tn, tk, True):
                    return tm, tn, tk, True

    # Last resort: smallest tiles.
    return tm_cands[-1], tn_cands[-1], tk_cands[-1], True


# ---------------------------------------------------------------------------
# Wrapper
# ---------------------------------------------------------------------------

def projection_layer(x, weight, bias):
    """nn.Linear forward: y = x @ W.T + b.

    x: [..., d_model]; weight: [vocab_size, d_model]; bias: [vocab_size].
    """
    *lead, d_model = x.shape
    vocab_size, wk = weight.shape
    assert wk == d_model, "weight must be [vocab_size, d_model]"
    assert bias.shape == (vocab_size,)

    M = int(math.prod(lead)) if lead else 1
    K, N = d_model, vocab_size

    out_dtype = x.dtype
    in_itemsize = max(jnp.dtype(x.dtype).itemsize, jnp.dtype(weight.dtype).itemsize)
    out_itemsize = jnp.dtype(out_dtype).itemsize

    budget = _vmem_budget_bytes()
    TM, TN, TK, k_tiled = _choose_tiles(M, K, N, in_itemsize, out_itemsize, budget)

    M_pad = _round_up(M, TM)
    N_pad = _round_up(N, TN)
    K_pad = _round_up(K, TK) if k_tiled else K   # full-K block == full dim, no pad

    x2d = x.reshape(M, K)
    if (M_pad, K_pad) != (M, K):
        x2d = jnp.pad(x2d, ((0, M_pad - M), (0, K_pad - K)))
    w = weight
    if (N_pad, K_pad) != (N, K):
        w = jnp.pad(w, ((0, N_pad - N), (0, K_pad - K)))
    b2d = bias.reshape(1, N)
    if N_pad != N:
        b2d = jnp.pad(b2d, ((0, 0), (0, N_pad - N)))

    cost = pl.CostEstimate(
        flops=2 * M * K * N,
        transcendentals=0,
        bytes_accessed=(M * K * jnp.dtype(x.dtype).itemsize
                        + N * K * jnp.dtype(weight.dtype).itemsize
                        + N * jnp.dtype(bias.dtype).itemsize
                        + M * N * out_itemsize),
    )

    if not k_tiled:
        grid = (M_pad // TM, N_pad // TN)
        in_specs = [
            pl.BlockSpec((TM, K_pad), lambda i, j: (i, 0)),   # activations
            pl.BlockSpec((TN, K_pad), lambda i, j: (j, 0)),   # weight (native layout)
            pl.BlockSpec((1, TN), lambda i, j: (0, j)),       # bias row
        ]
        out_specs = pl.BlockSpec((TM, TN), lambda i, j: (i, j))
        scratch = ()
        kernel = _linear_kernel_fullk
        dims = ("parallel", "parallel")
    else:
        grid = (M_pad // TM, N_pad // TN, K_pad // TK)
        in_specs = [
            pl.BlockSpec((TM, TK), lambda i, j, k: (i, k)),
            pl.BlockSpec((TN, TK), lambda i, j, k: (j, k)),
            pl.BlockSpec((1, TN), lambda i, j, k: (0, j)),
        ]
        out_specs = pl.BlockSpec((TM, TN), lambda i, j, k: (i, j))
        scratch = (pltpu.VMEM((TM, TN), jnp.float32),)
        kernel = _linear_kernel_ktiled
        dims = ("parallel", "parallel", "arbitrary")

    out2d = pl.pallas_call(
        kernel,
        out_shape=jax.ShapeDtypeStruct((M_pad, N_pad), out_dtype),
        grid_spec=pltpu.PrefetchScalarGridSpec(
            num_scalar_prefetch=0,
            grid=grid,
            in_specs=in_specs,
            out_specs=out_specs,
            scratch_shapes=scratch,
        ),
        compiler_params=pltpu.CompilerParams(
            dimension_semantics=dims,
            vmem_limit_bytes=budget,
        ),
        cost_estimate=cost,
    )(x2d, w, b2d)

    out2d = out2d[:M, :N]
    return out2d.reshape(*lead, N)


if __name__ == "__main__":
    # Small shapes implied by the module: batch=2, seq=8, d_model=32, vocab=128.
    B, S, D_MODEL, VOCAB = 2, 8, 32, 128

    key = jax.random.PRNGKey(0)
    kx, kw, kb = jax.random.split(key, 3)

    x = jax.random.normal(kx, (B, S, D_MODEL), jnp.float32)
    weight = jax.random.normal(kw, (VOCAB, D_MODEL), jnp.float32) * (1.0 / math.sqrt(D_MODEL))
    bias = jax.random.normal(kb, (VOCAB,), jnp.float32) * 0.02

    out = projection_layer(x, weight, bias)
    jax.block_until_ready(out)

    # Reference: plain-JAX nn.Linear semantics (y = x @ W.T + b).
    ref = x @ weight.T + bias
    assert out.shape == (B, S, VOCAB)
    assert jnp.allclose(out, ref, atol=1e-4, rtol=1e-4), "mismatch vs reference"

    print("KERNEL_OK")
</pallas_src>

<mosaic_0001>
module attributes {stable_mosaic.version = 11 : i64} {
  func.func @_linear_kernel_fullk(%arg0: i32, %arg1: i32, %arg2: memref<16x32xf32, #tpu.memory_space<vmem>>, %arg3: memref<128x32xf32, #tpu.memory_space<vmem>>, %arg4: memref<1x128xf32, #tpu.memory_space<vmem>>, %arg5: memref<16x128xf32, #tpu.memory_space<vmem>>) attributes {dimension_semantics = [#tpu.dimension_semantics<parallel>, #tpu.dimension_semantics<parallel>], iteration_bounds = array<i64: 1, 1>, scalar_prefetch = 0 : i64, scratch_operands = 0 : i64, tpu.core_type = #tpu.core_type<tc>, window_params = [{transform_indices = @transform_0, window_bounds = array<i64: 16, 32>}, {transform_indices = @transform_1, window_bounds = array<i64: 128, 32>}, {transform_indices = @transform_2, window_bounds = array<i64: 1, 128>}, {transform_indices = @transform_3, window_bounds = array<i64: 16, 128>}]} {
    %c0 = arith.constant 0 : index
    %c0_0 = arith.constant 0 : index
    %0 = vector.load %arg2[%c0, %c0_0] : memref<16x32xf32, #tpu.memory_space<vmem>>, vector<16x32xf32>
    %c0_1 = arith.constant 0 : index
    %c0_2 = arith.constant 0 : index
    %1 = vector.load %arg3[%c0_1, %c0_2] : memref<128x32xf32, #tpu.memory_space<vmem>>, vector<128x32xf32>
    %cst = arith.constant dense<0.000000e+00> : vector<16x128xf32>
    %2 = tpu.matmul %0, %1, %cst {dimension_numbers = #tpu.dot_dimension_numbers<[1], [1], [0], [0], [0, 0, 1, 0], [], []>} : vector<16x32xf32>, vector<128x32xf32>, vector<16x128xf32> -> vector<16x128xf32>
    %c0_3 = arith.constant 0 : index
    %c0_4 = arith.constant 0 : index
    %3 = vector.load %arg4[%c0_3, %c0_4] : memref<1x128xf32, #tpu.memory_space<vmem>>, vector<1x128xf32>
    %4 = vector.broadcast %3 : vector<1x128xf32> to vector<16x128xf32>
    %5 = arith.addf %2, %4 : vector<16x128xf32>
    %c0_5 = arith.constant 0 : index
    %c0_6 = arith.constant 0 : index
    %6 = vector.load %arg5[%c0_5, %c0_6] : memref<16x128xf32, #tpu.memory_space<vmem>>, vector<16x128xf32>
    tpu.vector_store %arg5[%c0_5, %c0_6], %5 {strides = array<i32>} : memref<16x128xf32, #tpu.memory_space<vmem>>, vector<16x128xf32>,
    return
  }
  func.func @transform_0(%arg0: i32, %arg1: i32) -> (i32, i32) {
    %c0_i32 = arith.constant 0 : i32
    %c0_i32_0 = arith.constant 0 : i32
    return %arg0, %c0_i32 : i32, i32
  }
  func.func @transform_1(%arg0: i32, %arg1: i32) -> (i32, i32) {
    %c0_i32 = arith.constant 0 : i32
    %c0_i32_0 = arith.constant 0 : i32
    return %arg1, %c0_i32 : i32, i32
  }
  func.func @transform_2(%arg0: i32, %arg1: i32) -> (i32, i32) {
    %c0_i32 = arith.constant 0 : i32
    %c0_i32_0 = arith.constant 0 : i32
    return %c0_i32, %arg1 : i32, i32
  }
  func.func @transform_3(%arg0: i32, %arg1: i32) -> (i32, i32) {
    %c0_i32 = arith.constant 0 : i32
    return %arg0, %arg1 : i32, i32
  }
}

</mosaic_0001>

<bundles_post_ra>
// kernel: tpu_custom_call.1
= control target key start
LH: loop header
LB: loop body
LE: loop exit
PB: predicated region body
PF: predicated region fallthrough
CT: control target
= control target key end

     0   :  { %vm37_vm0 = vcmask 261120   ;;  %s316_s0 = inlined_call_operand.vmem [shape: f32[16,32], index: 0, kind: input, shape index: {}]   ;;  %s317_s1 = inlined_call_operand.vmem [shape: f32[128,32], index: 1, kind: input, shape index: {}]   ;;  %s318_s2 = inlined_call_operand.vmem [shape: f32[1,128], index: 2, kind: input, shape index: {}]   ;;  %s319_s3 = inlined_call_operand.hbm [shape: f32[16,128], index: 3, kind: output, shape index: {}]  }
   0x1   :  { %v32_v0 = vld [vmem:[%s317_s1 + $0x78] sm:$0xff]  ;;  %v31_v1 = vld [vmem:[%s317_s1 + $0x70] sm:$0xff] }
   0x2   :  { %135 = vmatpush.xpose.msk.msra.mxu0 %vm37_vm0, %v32_v0  ;;  %153 = vmatpush.xpose.msk.msra.mxu1 %vm37_vm0, %v32_v0 }
   0x3   :  { %8 = vsyncpa [#allocation3], 0  ;;  %v30_v2 = vld [vmem:[%s317_s1 + $0x68] sm:$0xff]  ;;  %v29_v3 = vld [vmem:[%s317_s1 + $0x60] sm:$0xff]  ;;  %s123_s26 = sshll.u32 %s319_s3, 4  ;;  %s201_s27 = smov 8   ;;  %s124_s26 = int_to_ptr.hbm [resolvable:$true] %s123_s26 }
   0x4   :  { %v28_v4 = vld [vmem:[%s317_s1 + $0x58] sm:$0xff]  ;;  %v27_v5 = vld [vmem:[%s317_s1 + $0x50] sm:$0xff]  ;;  %v26_v6 = vld [vmem:[%s317_s1 + $0x48] sm:$0xff] }
   0x5   :  { %v25_v7 = vld [vmem:[%s317_s1 + $0x40] sm:$0xff]  ;;  %v24_v8 = vld [vmem:[%s317_s1 + $0x38] sm:$0xff]  ;;  %v23_v9 = vld [vmem:[%s317_s1 + $0x30] sm:$0xff] }
   0x6   :  { %136 = vmatpush.xpose.msk.msra.mxu0 %vm37_vm0, %v31_v1  ;;  %154 = vmatpush.xpose.msk.msra.mxu1 %vm37_vm0, %v31_v1  ;;  %v22_v10 = vld [vmem:[%s317_s1 + $0x28] sm:$0xff]  ;;  %v21_v11 = vld [vmem:[%s317_s1 + $0x20] sm:$0xff]  ;;  %v20_v12 = vld [vmem:[%s317_s1 + $0x18] sm:$0xff] }
   0x7   :  { %v19_v13 = vld [vmem:[%s317_s1 + $0x10] sm:$0xff]  ;;  %v18_v14 = vld [vmem:[%s317_s1 + $0x8] sm:$0xff]  ;;  %v17_v15 = vld [vmem:[%s317_s1] sm:$0xff]  ;;  %s199_s1 = smov [#allocation2]  }
   0x8   :  { %v15_v16 = vld [vmem:[%s316_s0] sm:$0xff]  ;;  %v16_v17 = vld [vmem:[%s316_s0 + $0x8] sm:$0xff]  ;;  %s121_s23 = sshll.u32 %s199_s1, 4  ;;  %s200_s0 = smov 128   ;;  %s122_s23 = int_to_ptr.vmem [resolvable:$true] %s121_s23 }
   0x9   :  { %v172_v18 = vld [vmem:[%s318_s2] ss:$0 sm:$0xff] }
   0xa   :  { %137 = vmatpush.xpose.msk.msra.mxu0 %vm37_vm0, %v30_v2  ;;  %155 = vmatpush.xpose.msk.msra.mxu1 %vm37_vm0, %v30_v2 }
   0xe   :  { %138 = vmatpush.xpose.msk.msra.mxu0 %vm37_vm0, %v29_v3  ;;  %156 = vmatpush.xpose.msk.msra.mxu1 %vm37_vm0, %v29_v3 }
  0x12   :  { %139 = vmatpush.xpose.msk.msra.mxu0 %vm37_vm0, %v28_v4  ;;  %157 = vmatpush.xpose.msk.msra.mxu1 %vm37_vm0, %v28_v4 }
  0x16   :  { %140 = vmatpush.xpose.msk.msra.mxu0 %vm37_vm0, %v27_v5  ;;  %158 = vmatpush.xpose.msk.msra.mxu1 %vm37_vm0, %v27_v5 }
  0x1a   :  { %141 = vmatpush.xpose.msk.msra.mxu0 %vm37_vm0, %v26_v6  ;;  %159 = vmatpush.xpose.msk.msra.mxu1 %vm37_vm0, %v26_v6 }
  0x1e   :  { %142 = vmatpush.xpose.msk.msra.mxu0 %vm37_vm0, %v25_v7  ;;  %160 = vmatpush.xpose.msk.msra.mxu1 %vm37_vm0, %v25_v7 }
  0x22   :  { %143 = vmatpush.xpose.msk.msra.mxu0 %vm37_vm0, %v24_v8  ;;  %161 = vmatpush.xpose.msk.msra.mxu1 %vm37_vm0, %v24_v8 }
  0x26   :  { %144 = vmatpush.xpose.msk.msra.mxu0 %vm37_vm0, %v23_v9  ;;  %162 = vmatpush.xpose.msk.msra.mxu1 %vm37_vm0, %v23_v9 }
  0x2a   :  { %145 = vmatpush.xpose.msk.msra.mxu0 %vm37_vm0, %v22_v10  ;;  %163 = vmatpush.xpose.msk.msra.mxu1 %vm37_vm0, %v22_v10 }
  0x2e   :  { %146 = vmatpush.xpose.msk.msra.mxu0 %vm37_vm0, %v21_v11  ;;  %164 = vmatpush.xpose.msk.msra.mxu1 %vm37_vm0, %v21_v11 }
  0x32   :  { %147 = vmatpush.xpose.msk.msra.mxu0 %vm37_vm0, %v20_v12  ;;  %165 = vmatpush.xpose.msk.msra.mxu1 %vm37_vm0, %v20_v12 }
  0x36   :  { %148 = vmatpush.xpose.msk.msra.mxu0 %vm37_vm0, %v19_v13  ;;  %166 = vmatpush.xpose.msk.msra.mxu1 %vm37_vm0, %v19_v13 }
  0x3a   :  { %149 = vmatpush.xpose.msk.msra.mxu0 %vm37_vm0, %v18_v14  ;;  %167 = vmatpush.xpose.msk.msra.mxu1 %vm37_vm0, %v18_v14 }
  0x3e   :  { %150 = vmatpush.xpose.msk.msra.mxu0 %vm37_vm0, %v17_v15  ;;  %168 = vmatpush.xpose.msk.msra.mxu1 %vm37_vm0, %v17_v15 }
  0x41   :  { %151 = vmatmul.msk.f32.vlgmr.msra.gmra.mxu0 %vm37_vm0, %v15_v16  ;;  %152 = vmatmul.msk.f32.vlgmr.msra.gmra.mxu1 %vm37_vm0, %v16_v17 }
  0xbe   :  { %v109_v19 = vpop.f32.mrf.mxu0  ;;  %v112_v20 = vpop.f32.mrf.mxu1 }
  0xbf   :  { %v110_v21 = vadd.f32 %v172_v18, %v109_v19  ;;  %v113_v22 = vadd.f32 %v172_v18, %v112_v20 }
  0xc1   :  { %115 = vst [vmem:[#allocation2] sm:$0xff] %v110_v21 }
  0xc2   :  { %116 = vst [vmem:[#allocation2 + $0x8] sm:$0xff] %v113_v22 }
  0xc3   :  { %129 = dma.vmem_to_hbm [thread:$0]  %s122_s23, 256, %s124_s26, [#allocation3], %s200_s0, %s200_s0, %s201_s27  }
  0xc4   :  { %197 = dma.done.wait [#allocation3], 256  }
  0xc5   :  { %198 = vsyncadd [#allocation3], 4294967040 }
  0xc6   :  { %134 = vsyncpa [#allocation3], 1 }

</bundles_post_ra>
